<compile_context>
chip_gen: v7x
topology: tpu7x:2x2x1
jax: 0.10.0
libtpu: 0.0.40
codegen_flags: <defaults>
</compile_context>

<pallas_src>
import jax
import jax.numpy as jnp
from jax.experimental import pallas as pl
from jax.experimental.pallas import tpu as pltpu


def nfl_mlp_kernel(x_ref, w1_ref, b1_ref, w2_ref, b2_ref, o_ref):
    # x_ref : [D, TB]  (bf16 or f32)   batch on lanes
    # w1_ref: [H, D]   (bf16 or f32)   fc1.weight, VMEM-resident
    # b1_ref: [H, 1]   f32             fc1.bias (column, broadcasts over lanes)
    # w2_ref: [H, 1]   f32             fc2.weight (column)
    # b2_ref: [1, 1]   f32 in SMEM     fc2.bias (scalar)
    # o_ref : [1, TB]  f32             lane-dense output block

    # Layer 1 on the MXU: [H, D] @ [D, TB] -> [H, TB], f32 accumulation.
    h = jnp.dot(w1_ref[...], x_ref[...], preferred_element_type=jnp.float32)
    # Bias + ReLU in f32 on the VPU.
    h = jnp.maximum(h + b1_ref[...], 0.0)
    # Dropout(p=0.2) is identity in eval mode.
    # Layer 2 as VPU multiply + cross-sublane (XLU) reduce over H — avoids an
    # N=1 MXU pass whose result would be one lane wide.
    y = jnp.sum(h * w2_ref[...], axis=0, keepdims=True)      # [1, TB]
    o_ref[...] = y + b2_ref[0, 0]


def nfl_predictor(x, w1, b1, w2, b2, *, block_b=2048, use_bf16=True):
    """x: [B, D] f32; w1: [H, D]; b1: [H]; w2: [1, H]; b2: [1]  (PyTorch layout)."""
    B, D = x.shape
    H = w1.shape[0]

    compute_dtype = jnp.bfloat16 if use_bf16 else jnp.float32

    # Batch-on-lanes layout (one transpose in the wrapper — layout plumbing).
    xT = x.T.astype(compute_dtype)                  # [D, B]
    w1c = w1.astype(compute_dtype)                  # [H, D]
    b1_col = b1.reshape(H, 1).astype(jnp.float32)   # [H, 1]
    w2_col = w2.reshape(H, 1).astype(jnp.float32)   # [H, 1]
    b2_sc = b2.reshape(1, 1).astype(jnp.float32)    # [1, 1] -> SMEM

    # Batch tile: multiple of 128 (lane width), capped so tiny batches use one block.
    tb = max(128, min(int(block_b), pl.cdiv(B, 128) * 128))
    tb = (tb // 128) * 128
    num_blocks = pl.cdiv(B, tb)
    b_pad = num_blocks * tb
    if b_pad != B:
        xT = jnp.pad(xT, ((0, 0), (0, b_pad - B)))

    out = pl.pallas_call(
        nfl_mlp_kernel,
        out_shape=jax.ShapeDtypeStruct((1, b_pad), jnp.float32),
        grid=(num_blocks,),
        in_specs=[
            pl.BlockSpec((D, tb), lambda i: (0, i)),        # x streams over batch
            pl.BlockSpec((H, D), lambda i: (0, 0)),         # W1 resident
            pl.BlockSpec((H, 1), lambda i: (0, 0)),         # b1 resident
            pl.BlockSpec((H, 1), lambda i: (0, 0)),         # w2 resident
            pl.BlockSpec(memory_space=pltpu.MemorySpace.SMEM),  # b2 scalar in SMEM
        ],
        out_specs=pl.BlockSpec((1, tb), lambda i: (0, i)),  # lane-dense output
        compiler_params=pltpu.CompilerParams(
            dimension_semantics=("parallel",)),             # megacore on v7x
    )(xT, w1c, b1_col, w2_col, b2_sc)

    return out[0, :B][:, None]                              # [B, 1]


def init_params(key, input_dim, hidden=15, out=1):
    """Deterministic init mimicking PyTorch nn.Linear (uniform ±1/sqrt(fan_in))."""
    k1, k2, k3, k4 = jax.random.split(key, 4)
    bound1 = 1.0 / jnp.sqrt(jnp.float32(input_dim))
    bound2 = 1.0 / jnp.sqrt(jnp.float32(hidden))
    w1 = jax.random.uniform(k1, (hidden, input_dim), jnp.float32, -bound1, bound1)
    b1 = jax.random.uniform(k2, (hidden,), jnp.float32, -bound1, bound1)
    w2 = jax.random.uniform(k3, (out, hidden), jnp.float32, -bound2, bound2)
    b2 = jax.random.uniform(k4, (out,), jnp.float32, -bound2, bound2)
    return w1, b1, w2, b2


if __name__ == "__main__":
    key = jax.random.PRNGKey(0)
    kx, kp = jax.random.split(key)

    B, D, H = 300, 16, 15               # input_dim=16 standardized features
    x = jax.random.normal(kx, (B, D), jnp.float32)
    w1, b1, w2, b2 = init_params(kp, D, hidden=H, out=1)

    # block_b=128 so the demo exercises a multi-step pipelined grid (3 steps)
    # plus the ragged-batch padding path (300 -> 384).
    out = nfl_predictor(x, w1, b1, w2, b2, block_b=128)
    out = jax.block_until_ready(out)

    # Reference matching the kernel's numerics (bf16 layer-1 matmul, f32 acc).
    xb, w1b = x.astype(jnp.bfloat16), w1.astype(jnp.bfloat16)
    h_ref = jnp.maximum(
        jnp.dot(xb, w1b.T, preferred_element_type=jnp.float32) + b1[None, :], 0.0)
    ref_bf16 = h_ref @ w2.T + b2[None, :]
    # Pure-f32 reference (semantic sanity, looser tolerance for the bf16 cast).
    ref_f32 = jnp.maximum(x @ w1.T + b1[None, :], 0.0) @ w2.T + b2[None, :]

    assert out.shape == (B, 1)
    assert jnp.allclose(out, ref_bf16, atol=1e-3, rtol=1e-3), \
        float(jnp.max(jnp.abs(out - ref_bf16)))
    assert jnp.allclose(out, ref_f32, atol=5e-2, rtol=5e-2), \
        float(jnp.max(jnp.abs(out - ref_f32)))

    print("KERNEL_OK")
</pallas_src>

<mosaic_0001>
module attributes {stable_mosaic.version = 11 : i64} {
  func.func @nfl_mlp_kernel(%arg0: i32, %arg1: memref<16x128xbf16, #tpu.memory_space<vmem>>, %arg2: memref<15x16xbf16, #tpu.memory_space<vmem>>, %arg3: memref<15x1xf32, #tpu.memory_space<vmem>>, %arg4: memref<15x1xf32, #tpu.memory_space<vmem>>, %arg5: memref<1x1xf32, #tpu.memory_space<smem>>, %arg6: memref<1x128xf32, #tpu.memory_space<vmem>>) attributes {dimension_semantics = [#tpu.dimension_semantics<parallel>], iteration_bounds = array<i64: 3>, scalar_prefetch = 0 : i64, scratch_operands = 0 : i64, tpu.core_type = #tpu.core_type<tc>, window_params = [{transform_indices = @transform_0, window_bounds = array<i64: 16, 128>}, {pipeline_mode = #tpu.pipeline_mode<synchronous>, transform_indices = @transform_1, window_bounds = array<i64: 15, 16>}, {pipeline_mode = #tpu.pipeline_mode<synchronous>, transform_indices = @transform_2, window_bounds = array<i64: 15, 1>}, {pipeline_mode = #tpu.pipeline_mode<synchronous>, transform_indices = @transform_3, window_bounds = array<i64: 15, 1>}, {transform_indices = @transform_4, window_bounds = array<i64: 1, 1>}, {transform_indices = @transform_5, window_bounds = array<i64: 1, 128>}]} {
    %c0 = arith.constant 0 : index
    %c0_0 = arith.constant 0 : index
    %0 = vector.load %arg2[%c0, %c0_0] : memref<15x16xbf16, #tpu.memory_space<vmem>>, vector<15x16xbf16>
    %c0_1 = arith.constant 0 : index
    %c0_2 = arith.constant 0 : index
    %1 = vector.load %arg1[%c0_1, %c0_2] : memref<16x128xbf16, #tpu.memory_space<vmem>>, vector<16x128xbf16>
    %cst = arith.constant dense<0.000000e+00> : vector<15x128xf32>
    %2 = tpu.matmul %0, %1, %cst {dimension_numbers = #tpu.dot_dimension_numbers<[1], [0], [0], [1], [0, 0, 1, 1], [], []>} : vector<15x16xbf16>, vector<16x128xbf16>, vector<15x128xf32> -> vector<15x128xf32>
    %c0_3 = arith.constant 0 : index
    %c0_4 = arith.constant 0 : index
    %3 = vector.load %arg3[%c0_3, %c0_4] : memref<15x1xf32, #tpu.memory_space<vmem>>, vector<15x1xf32>
    %4 = vector.broadcast %3 : vector<15x1xf32> to vector<15x128xf32>
    %5 = arith.addf %2, %4 : vector<15x128xf32>
    %cst_5 = arith.constant 0.000000e+00 : f32
    %6 = vector.broadcast %cst_5 : f32 to vector<15x128xf32>
    %7 = arith.maximumf %5, %6 : vector<15x128xf32>
    %c0_6 = arith.constant 0 : index
    %c0_7 = arith.constant 0 : index
    %8 = vector.load %arg4[%c0_6, %c0_7] : memref<15x1xf32, #tpu.memory_space<vmem>>, vector<15x1xf32>
    %9 = vector.broadcast %8 : vector<15x1xf32> to vector<15x128xf32>
    %10 = arith.mulf %7, %9 : vector<15x128xf32>
    %cst_8 = arith.constant dense<0.000000e+00> : vector<128xf32>
    %11 = vector.multi_reduction <add>, %10, %cst_8 [0] : vector<15x128xf32> to vector<128xf32>
    %12 = vector.shape_cast %11 : vector<128xf32> to vector<1x128xf32>
    %c0_9 = arith.constant 0 : index
    %c0_10 = arith.constant 0 : index
    %13 = memref.load %arg5[%c0_9, %c0_10] : memref<1x1xf32, #tpu.memory_space<smem>>
    %14 = vector.broadcast %13 : f32 to vector<1x128xf32>
    %15 = arith.addf %12, %14 : vector<1x128xf32>
    %c0_11 = arith.constant 0 : index
    %c0_12 = arith.constant 0 : index
    %16 = vector.load %arg6[%c0_11, %c0_12] : memref<1x128xf32, #tpu.memory_space<vmem>>, vector<1x128xf32>
    tpu.vector_store %arg6[%c0_11, %c0_12], %15 {strides = array<i32>} : memref<1x128xf32, #tpu.memory_space<vmem>>, vector<1x128xf32>,
    return
  }
  func.func @transform_0(%arg0: i32) -> (i32, i32) {
    %c0_i32 = arith.constant 0 : i32
    %c0_i32_0 = arith.constant 0 : i32
    return %c0_i32, %arg0 : i32, i32
  }
  func.func @transform_1(%arg0: i32) -> (i32, i32) {
    %c0_i32 = arith.constant 0 : i32
    %c0_i32_0 = arith.constant 0 : i32
    %c0_i32_1 = arith.constant 0 : i32
    return %c0_i32, %c0_i32_0 : i32, i32
  }
  func.func @transform_2(%arg0: i32) -> (i32, i32) {
    %c0_i32 = arith.constant 0 : i32
    %c0_i32_0 = arith.constant 0 : i32
    %c0_i32_1 = arith.constant 0 : i32
    return %c0_i32, %c0_i32_0 : i32, i32
  }
  func.func @transform_3(%arg0: i32) -> (i32, i32) {
    %c0_i32 = arith.constant 0 : i32
    %c0_i32_0 = arith.constant 0 : i32
    %c0_i32_1 = arith.constant 0 : i32
    return %c0_i32, %c0_i32_0 : i32, i32
  }
  func.func @transform_4(%arg0: i32) -> (i32, i32) {
    %c0_i32 = arith.constant 0 : i32
    %c0_i32_0 = arith.constant 0 : i32
    %c0_i32_1 = arith.constant 0 : i32
    return %c0_i32, %c0_i32_0 : i32, i32
  }
  func.func @transform_5(%arg0: i32) -> (i32, i32) {
    %c0_i32 = arith.constant 0 : i32
    %c0_i32_0 = arith.constant 0 : i32
    return %c0_i32, %arg0 : i32, i32
  }
}

</mosaic_0001>

<bundles_post_ra>
// kernel: tpu_custom_call.1
= control target key start
LH: loop header
LB: loop body
LE: loop exit
PB: predicated region body
PF: predicated region fallthrough
CT: control target
= control target key end

     0   :  { %s734_s0 = inlined_call_operand.vmem [shape: bf16[16,384], index: 0, kind: input, shape index: {}]   ;;  %s735_s1 = inlined_call_operand.vmem [shape: bf16[15,16], index: 1, kind: input, shape index: {}]   ;;  %s736_s2 = inlined_call_operand.vmem [shape: f32[15,1], index: 2, kind: input, shape index: {}]   ;;  %s737_s3 = inlined_call_operand.vmem [shape: f32[15,1], index: 3, kind: input, shape index: {}]   ;;  %s738_s4 = inlined_call_operand.<no memory space> [shape: f32[1,1], index: 4, kind: input, shape index: {}]   ;;  %s739_s5 = inlined_call_operand.hbm [shape: f32[1,384], index: 5, kind: output, shape index: {}]  }
   0x1   :  { %10 = sst [smem:[#allocation2]] %s738_s4 }
   0x2   :  { %11 = vsyncpa [#allocation5], 0 }
   0x3   :  { %13 = vsyncpa [#allocation5 + $0x1], 0  ;;  %s612_s20 = smov 0   ;;  %s614_s21 = smov 0  }
   0x4   :  { %s616_s22 = smov 0   ;;  %s618_s23 = smov 0  }
   0x5 LB: > { %s443_s4 = sadd.s32 4294967295, %s573_s23   ;;  %s444_s24 = sadd.s32 4294967294, %s573_s23   ;;  %s573_s23 = sphi %s618_s23, %s745_s23   ;;  %s569_s22 = sphi %s616_s22, %s744_s22   ;;  %s565_s21 = sphi %s614_s21, %s743_s21   ;;  %s561_s20 = sphi %s612_s20, %s742_s20  }
   0x6   : > { %s635_s25 = sadd.s32 1, %s573_s23   ;;  %s26_s26 = sadd.s32 1, %s569_s22 }
   0x7   : > { %s23_s27 = ssub.s32 %s573_s23, %s635_s25  ;;  %p33_p0 = scmp.ne.s32.totalorder %s569_s22, %s565_s21 }
   0x8   : > { %p24_p1 = scmp.eq.s32.totalorder %s23_s27, 0  ;;  %p34_p2 = scmp.eq.s32.totalorder %s573_s23, 0 }
   0x9   : > { %p147_p3 = scmp.eq.s32.totalorder %s443_s4, 2  ;;  %p152_p4 = scmp.ne.s32.totalorder %s565_s21, %s561_s20 }
   0xa   : > { %s648_s28 = scalar_select %p24_p1, %s569_s22, %s26_s26  }
   0xb   : > { %p35_p5 = por %p34_p2, %p33_p0  ;;  %p650_p6 = por %p147_p3, %p33_p0 }
   0xc   : > { %p153_p7 = scmp.eq.s32.totalorder %s444_s24, 2  ;;  %p446_p9 = scmp.ge.s32.totalorder %s573_s23, 3 }
   0xe   : > { %p654_p8 = por %p153_p7, %p152_p4  ;;  %181 = sbr.rel (%p446_p9) target bundleno = 28 (0x1c), region = 32 }
  0x15   : > { %184 = sbr.rel (!%p35_p5) target bundleno = 28 (0x1c), region = 36  ;;  %s186_s6 = sand.u32 (%p35_p5), 1, %s569_s22  }
  0x16   : > { %s448_s7 = sshll.u32 (%p35_p5), %s573_s23, 2  ;;  %s447_s8 = sshll.u32 (%p35_p5), %s186_s6, 3 }
  0x17   : > { %s190_s11 = scalar_lea.vmem (%p35_p5), %s734_s0, %s448_s7  ;;  %s188_s12 = scalar_lea.vmem (%p35_p5), [#allocation3], %s447_s8 }
  0x18   : > { %v206_v0 = vld [vmem:[%s190_s11] sm:$0xf] (%p35_p5)  ;;  %v208_v1 = vld [vmem:[%s190_s11 + $0xc] sm:$0xf] (%p35_p5) }
  0x19   : > { %207 = vst [vmem:[%s188_s12] sm:$0xf] (%p35_p5), %v206_v0  ;;  %209 = vst [vmem:[%s188_s12 + $0x4] sm:$0xf] (%p35_p5), %v208_v1 }
  0x1c PF: > { %p449_p10 = scmp.ge.s32.totalorder %s573_s23, 1  ;;  %p235_p11 = scmp.lt.s32.totalorder %s573_s23, 4 }
  0x1e   : > { %p236_p12 = pnand %p449_p10, %p235_p11 }
  0x1f   : > { %s667_s13 = sand.u32 (!%p236_p12), 1, %s565_s21   ;;  %v575_v2 = vmov (!%p236_p12), 0.0   ;;  %vm576_vm0 = vmmov (!%p236_p12), 0   ;;  %v577_v3 = vmov (!%p236_p12), 0   ;;  %v274_v4 = vld [vmem:[%s736_s2 + $0x8] sm:$0x7f] (!%p236_p12) }
  0x20   : > { %239 = sbr.rel (%p236_p12) target bundleno = 290 (0x122), region = 77  ;;  %459 = vmatprep.subr.bf16.mxu0 (!%p236_p12), %v575_v2  ;;  %s450_s14 = sshll.u32 (!%p236_p12), %s667_s13, 3  ;;  %461 = vmatprep.mubr.msk.bf16.mxu0 (!%p236_p12), %vm576_vm0, %v575_v2  ;;  %v344_v5 = vld [vmem:[%s737_s3 + $0x8] sm:$0x7f] (!%p236_p12)  ;;  %v510_v7 = vld [vmem:[%s735_s1] sm:$0xff] (!%p236_p12)   ;;  %vm296_vm1 = vcmask (!%p236_p12), 130048  }
  0x21   : > { %507 = vset.pattern.permute.xlu0 (!%p236_p12), %v577_v3  ;;  %508 = vset.pattern.permute.xlu1 (!%p236_p12), %v577_v3  ;;  %s244_s19 = scalar_lea.vmem (!%p236_p12), [#allocation3], %s450_s14  ;;  %v273_v8 = vld [vmem:[%s736_s2] sm:$0xff] (!%p236_p12)  ;;  %vm357_vm2 = vcmask (!%p236_p12), 1046528   ;;  %s366_s9 = sld [smem:[#allocation2]] (!%p236_p12) }
  0x22   : > { %v509_v6 = vld [vmem:[%s244_s19] sm:$0xff] (!%p236_p12)   ;;  %282 = vperm.xlu0 (!%p236_p12), %507, %v274_v4   ;;  %352 = vperm.xlu1 (!%p236_p12), %508, %v344_v5   ;;  %s454_s10 = sshll.u32 (!%p236_p12), %s443_s4, 4  ;;  %s267_s11 = scalar_lea.vmem (!%p236_p12), [#allocation4], %s667_s13 }
  0x23   : > { %v343_v9 = vld [vmem:[%s737_s3] sm:$0xff] (!%p236_p12)  ;;  %460 = vmatpush3.bf16.msra.mxu0 (!%p236_p12), %v509_v6  ;;  %s383_s12 = sshll.u32 (!%p236_p12), %s267_s11, 4  ;;  %s691_s16 = scalar_lea.hbm (!%p236_p12), %s739_s5, %s454_s10  ;;  %s693_s12 = int_to_ptr.vmem [resolvable:$true] %s383_s12 }
  0x24   : > { %s371_s17 = scalar_lea.sflag (!%p236_p12), [#allocation5], %s667_s13  ;;  %s511_s18 = scalar_lea.vmem (!%p236_p12), %s693_s12, 16 }
  0x25   : > { %p512_p13 = scmp.ne.s32.totalorder (!%p236_p12), %s693_s12, %s511_s18  ;;  %s578_s4 = smov (!%p236_p12), [#allocation4]  }
  0x26   : > { %277 = vperm.xlu0 (!%p236_p12), %507, %v273_v8   ;;  %347 = vperm.xlu1 (!%p236_p12), %508, %v343_v9   ;;  %s515_s19 = sshll.u32 (!%p236_p12), %s578_s4, 4  ;;  %s516_s19 = int_to_ptr.vmem [resolvable:$false] %s515_s19 }
  0x27   : > { %462 = vmatmul.mubr.msk.bf16.vlgmr.msra.gmra.mrb[0].mxu0 %vm296_vm1, %v510_v7  ;;  %v367_v31 = vstv %s366_s9  ;;  %p513_p0 = pnand %p512_p13, %p650_p6  ;;  %s517_s24 = scalar_lea.vmem %s516_s19, 32 }
  0x28   : > { %p518_p2 = scmp.lt.s32.totalorder %s693_s12, %s516_s19  ;;  %p519_p3 = scmp.lt.s32.totalorder %s517_s24, %s511_s18 }
  0x29   : > { %p514_p1 = pneg %p513_p0 }
  0x2a   : > { %p520_p4 = por %p519_p3, %p518_p2 }
  0x2c   : > { %p521_p5 = pnand %p520_p4, %p514_p1 }
  0xa1   : > { %v283_v10 = vpop.permute.xlu0 %282  ;;  %v353_v12 = vpop.permute.xlu1 %352 }
  0xa5   : > { %v278_v11 = vpop.permute.xlu0 %277  ;;  %v348_v21 = vpop.permute.xlu1 %347 }
  0xfa   : > { %v334_v13 = vpop.f32.mrb[0].mxu0 }
  0xfb   : > { %v335_v14 = vadd.f32 %v334_v13, %v278_v11  ;;  %v463_v15 = vpop.f32.mrb[1].mxu0 }
  0xfc   : > { %v337_v16 = vpop.f32.mrb[2].mxu0 }
  0xfd   : > { %v338_v17 = vadd.f32 %v337_v16, %v283_v10  ;;  %v464_v18 = vpop.f32.mrb[3].mxu0  ;;  %v341_v19 = vmax.f32 %v335_v14, 0.0 }
  0xff   : > { %v342_v20 = vmax.f32 %v338_v17, 0.0  ;;  %v355_v23 = vmul.f32 %v348_v21, %v341_v19 }
 0x101   : > { %v356_v22 = vmul.f32 %v353_v12, %v342_v20 }
 0x103   : > { %v358_v24 = vsel %vm357_vm2, %v356_v22, 0.0 }
 0x104   : > { %v359_v25 = vadd.f32 %v358_v24, %v355_v23 }
 0x106   : > { %v360_v26 = vrot.slane %v359_v25, 4 }
 0x108   : > { %v361_v27 = vadd.f32 %v360_v26, %v359_v25 }
 0x10a   : > { %v362_v28 = vrot.slane %v361_v27, 2 }
 0x10c   : > { %v363_v29 = vadd.f32 %v362_v28, %v361_v27 }
 0x10e   : > { %v364_v30 = vrot.slane %v363_v29, 1 }
 0x110   : > { %v365_v32 = vadd.f32 %v364_v30, %v363_v29 }
 0x112   : > { %v368_v33 = vadd.f32 %v367_v31, %v365_v32 }
 0x114   : > { %369 = vst [vmem:[%s267_s11] sm:$0x1] %v368_v33 }
 0x115   : > { %524 = shalt.err (!%p521_p5)
}
 0x116   : > { %s525_s13 = scalar_lea.hbm %s691_s16, 16  ;;  %s529_s6 = scalar_lea.hbm %s739_s5, 48 }
 0x117   : > { %p526_p7 = scmp.ne.s32.totalorder %s691_s16, %s525_s13  ;;  %p530_p11 = scmp.lt.u32.totalorder %s691_s16, %s739_s5 }
 0x118   : > { %p531_p12 = scmp.lt.u32.totalorder %s529_s6, %s525_s13  ;;  %p533_p0 = scmp.lt.u32.totalorder %s525_s13, %s691_s16 }
 0x119   : > { %p527_p9 = pnand %p526_p7, %p650_p6 }
 0x11a   : > { %p532_p13 = por %p531_p12, %p530_p11 }
 0x11b   : > { %p528_p10 = pneg %p527_p9 }
 0x11c   : > { %p534_p1 = por %p533_p0, %p532_p13 }
 0x11e   : > { %p535_p2 = pnand %p534_p1, %p528_p10 }
 0x120   : > { %538 = shalt.err (!%p535_p2)
}
 0x121   : > { %465 = dma.vmem_to_hbm [thread:$0]  (%p650_p6), %s693_s12, 16, %s691_s16, %s371_s17  }
 0x122 PF: > { %p471_p3 = scmp.ge.s32.totalorder %s573_s23, 2  ;;  %s395_s9 = sand.u32 1, %s561_s20  }
 0x123   : > { %s396_s10 = scalar_lea.sflag [#allocation5], %s395_s9 }
 0x124   : > { %p468_p4 = pnand %p471_p3, %p654_p8 }
 0x126   : > { %556 = dma.done.wait (!%p468_p4), %s396_s10, 16  }
 0x127   : > { %558 = vsyncadd (!%p468_p4), %s396_s10, 4294967280  ;;  %p16_p5 = scmp.ge.s32.totalorder %s635_s25, 5   ;;  %s742_s20 = smov %s565_s21 }
 0x128   : > { %s743_s21 = smov %s569_s22  ;;  %s744_s22 = smov %s648_s28 }
 0x129   : > { %s745_s23 = smov %s635_s25  ;;  %18 = sbr.rel (!%p16_p5) target bundleno = 5 (0x5), region = 121 }
 0x130   :  { %400 = vsyncpa [#allocation5], 1 }
 0x131   :  { %402 = vsyncpa [#allocation5 + $0x1], 1 }

</bundles_post_ra>
